<compile_context>
chip_gen: v5e
topology: v5e:2x2
jax: 0.10.0
libtpu: 0.0.40
codegen_flags: <defaults>
</compile_context>

<pallas_src>
import functools

import jax
import jax.numpy as jnp
from jax.experimental import pallas as pl
from jax.experimental.pallas import tpu as pltpu

EPS = 1e-5
LANE = 128          # lane width: channel / K dims padded to multiples of this
MAX_SINGLE_K = 4608  # 3x3 conv with <=512 in-channels: keep K un-tiled
TK_MULTI = 512       # K tile when K must be tiled (weights stay VMEM-resident)


# ----------------------------------------------------------------------------
# Generation-aware sizing
# ----------------------------------------------------------------------------
def _vmem_capacity_bytes():
    try:
        info = pltpu.get_tpu_info()
        cap = getattr(info, "vmem_capacity_bytes", None)
        if cap:
            return int(cap)
    except Exception:
        pass
    return 64 * 1024 * 1024          # conservative fallback (v7x per-TC VMEM)


_VMEM_CAP = _vmem_capacity_bytes()
# Explicit scoped-VMEM cap with headroom; big tiles on v5e/v6e (128 MiB),
# conservative on v7x (64 MiB / TC).
VMEM_LIMIT = int(min(_VMEM_CAP * 3 // 4, 100 * 1024 * 1024))
_TM_MAX = 1024 if _VMEM_CAP >= 96 * 1024 * 1024 else 512


# ----------------------------------------------------------------------------
# Small helpers (host-side, static shapes)
# ----------------------------------------------------------------------------
def _round_up(x, m):
    return (x + m - 1) // m * m


def _m_tiling(m):
    """M (pixel-row) tile size and padded extent; 16-aligned for bf16 tiles."""
    tm = min(_TM_MAX, _round_up(m, 16))
    return tm, _round_up(m, tm)


def _k_pad(k):
    """Lane-dense padded contraction extent (single-K when it fits VMEM)."""
    kp = _round_up(k, LANE)
    if kp <= MAX_SINGLE_K:
        return kp
    return _round_up(k, TK_MULTI)


def _pad2d(x, rows, cols):
    return jnp.pad(x, ((0, rows - x.shape[0]), (0, cols - x.shape[1])))


def _pad1d(v, n):
    return jnp.pad(v, (0, n - v.shape[0]))


# ----------------------------------------------------------------------------
# Pallas kernels
# ----------------------------------------------------------------------------
def matmul_stats_1k_kernel(a_ref, w_ref, y_ref, ps_ref):
    """Single-K: y = A @ W (bf16 in, f32 math, bf16 out) + per-tile (sum, sumsq)."""
    y = jnp.dot(a_ref[...], w_ref[...], preferred_element_type=jnp.float32)
    y_ref[...] = y.astype(y_ref.dtype)
    s = jnp.sum(y, axis=0, keepdims=True)           # (1, Ncp)
    q = jnp.sum(y * y, axis=0, keepdims=True)       # (1, Ncp)
    ps_ref[...] = jnp.concatenate((s, q), axis=0)[None]   # (1, 2, Ncp)


def matmul_stats_kernel(a_ref, w_ref, y_ref, ps_ref, acc_ref, *, tk):
    """Multi-K: W is VMEM-resident (full extent), sliced per K step."""
    k = pl.program_id(1)

    @pl.when(k == 0)
    def _init():
        acc_ref[...] = jnp.zeros_like(acc_ref)

    k0 = pl.multiple_of(k * tk, tk)
    acc_ref[...] += jnp.dot(a_ref[...], w_ref[pl.ds(k0, tk), :],
                            preferred_element_type=jnp.float32)

    @pl.when(k == pl.num_programs(1) - 1)
    def _finalize():
        y = acc_ref[...]
        y_ref[...] = y.astype(y_ref.dtype)
        s = jnp.sum(y, axis=0, keepdims=True)
        q = jnp.sum(y * y, axis=0, keepdims=True)
        ps_ref[...] = jnp.concatenate((s, q), axis=0)[None]


def matmul_statsonly_kernel(a_ref, w_ref, ps_ref):
    """Stats-only pass for the 1x1-conv shortcut: no Y written to HBM."""
    y = jnp.dot(a_ref[...], w_ref[...], preferred_element_type=jnp.float32)
    s = jnp.sum(y, axis=0, keepdims=True)
    q = jnp.sum(y * y, axis=0, keepdims=True)
    ps_ref[...] = jnp.concatenate((s, q), axis=0)[None]


def bn_relu_kernel(y_ref, scale_ref, shift_ref, o_ref):
    """out = relu(y * scale + shift); scale/shift fold BN mean/var/gamma/beta."""
    y = y_ref[...].astype(jnp.float32)
    o_ref[...] = jnp.maximum(y * scale_ref[...] + shift_ref[...],
                             0.0).astype(o_ref.dtype)


def tail_shortcut_kernel(y2_ref, as_ref, ws_ref, s2_ref, t2_ref, ss_ref, ts_ref,
                         o_ref):
    """out = relu(bn2(y2) + bn_s(A_s @ W_s)); 1x1 conv recomputed on the MXU."""
    ys = jnp.dot(as_ref[...], ws_ref[...], preferred_element_type=jnp.float32)
    y = y2_ref[...].astype(jnp.float32) * s2_ref[...] + t2_ref[...]
    y = y + ys * ss_ref[...] + ts_ref[...]
    o_ref[...] = jnp.maximum(y, 0.0).astype(o_ref.dtype)


def tail_identity_kernel(y2_ref, res_ref, s2_ref, t2_ref, o_ref):
    """out = relu(bn2(y2) + residual)."""
    y = y2_ref[...].astype(jnp.float32) * s2_ref[...] + t2_ref[...]
    y = y + res_ref[...].astype(jnp.float32)
    o_ref[...] = jnp.maximum(y, 0.0).astype(o_ref.dtype)


# ----------------------------------------------------------------------------
# pallas_call drivers
# ----------------------------------------------------------------------------
def _row_spec(tm, ncp):
    return pl.BlockSpec((tm, ncp), lambda i: (i, 0))


def _vec_spec(ncp):
    return pl.BlockSpec((1, ncp), lambda i: (0, 0))


def _elementwise_params():
    return pltpu.CompilerParams(dimension_semantics=("parallel",),
                                vmem_limit_bytes=VMEM_LIMIT)


def _matmul_stats(a_pad, w_pad, tm):
    """Tiled matmul producing bf16 Y and per-M-tile BN partial stats (f32)."""
    m_pad, k_pad = a_pad.shape
    ncp = w_pad.shape[1]
    mt = m_pad // tm
    cost = pl.CostEstimate(
        flops=2 * m_pad * k_pad * ncp,
        transcendentals=0,
        bytes_accessed=int(a_pad.size * 2 + w_pad.size * 2
                           + m_pad * ncp * 2 + mt * 2 * ncp * 4))
    out_shape = (jax.ShapeDtypeStruct((m_pad, ncp), jnp.bfloat16),
                 jax.ShapeDtypeStruct((mt, 2, ncp), jnp.float32))

    if k_pad <= MAX_SINGLE_K:
        # Single-K: no K grid axis, no accumulator scratch, W resident in VMEM.
        return pl.pallas_call(
            matmul_stats_1k_kernel,
            out_shape=out_shape,
            grid=(mt,),
            in_specs=[pl.BlockSpec((tm, k_pad), lambda i: (i, 0)),
                      pl.BlockSpec((k_pad, ncp), lambda i: (0, 0))],
            out_specs=(pl.BlockSpec((tm, ncp), lambda i: (i, 0)),
                       pl.BlockSpec((1, 2, ncp), lambda i: (i, 0, 0))),
            compiler_params=pltpu.CompilerParams(
                dimension_semantics=("parallel",),
                vmem_limit_bytes=VMEM_LIMIT),
            cost_estimate=cost,
        )(a_pad, w_pad)

    # Multi-K fallback: grid over K, weight stays fully VMEM-resident.
    tk = TK_MULTI
    kt = k_pad // tk
    return pl.pallas_call(
        functools.partial(matmul_stats_kernel, tk=tk),
        out_shape=out_shape,
        grid=(mt, kt),
        in_specs=[pl.BlockSpec((tm, tk), lambda i, k: (i, k)),
                  pl.BlockSpec((k_pad, ncp), lambda i, k: (0, 0))],
        out_specs=(pl.BlockSpec((tm, ncp), lambda i, k: (i, 0)),
                   pl.BlockSpec((1, 2, ncp), lambda i, k: (i, 0, 0))),
        scratch_shapes=[pltpu.VMEM((tm, ncp), jnp.float32)],
        compiler_params=pltpu.CompilerParams(
            dimension_semantics=("parallel", "arbitrary"),
            vmem_limit_bytes=VMEM_LIMIT),
        cost_estimate=cost,
    )(a_pad, w_pad)


def _shortcut_stats(a_pad, w_pad, tm):
    """Stats-only 1x1-conv pass (no Y materialization)."""
    m_pad, ks_pad = a_pad.shape
    ncp = w_pad.shape[1]
    mt = m_pad // tm
    return pl.pallas_call(
        matmul_statsonly_kernel,
        out_shape=jax.ShapeDtypeStruct((mt, 2, ncp), jnp.float32),
        grid=(mt,),
        in_specs=[pl.BlockSpec((tm, ks_pad), lambda i: (i, 0)),
                  pl.BlockSpec((ks_pad, ncp), lambda i: (0, 0))],
        out_specs=pl.BlockSpec((1, 2, ncp), lambda i: (i, 0, 0)),
        compiler_params=_elementwise_params(),
    )(a_pad, w_pad)


def _apply_bn_relu(y, scale, shift, tm):
    m_pad, ncp = y.shape
    return pl.pallas_call(
        bn_relu_kernel,
        out_shape=jax.ShapeDtypeStruct((m_pad, ncp), jnp.bfloat16),
        grid=(m_pad // tm,),
        in_specs=[_row_spec(tm, ncp), _vec_spec(ncp), _vec_spec(ncp)],
        out_specs=_row_spec(tm, ncp),
        compiler_params=_elementwise_params(),
    )(y, scale, shift)


def _apply_tail_shortcut(y2, a_s, w_s, s2, t2, ss, ts, tm):
    m_pad, ncp = y2.shape
    ks_pad = a_s.shape[1]
    return pl.pallas_call(
        tail_shortcut_kernel,
        out_shape=jax.ShapeDtypeStruct((m_pad, ncp), jnp.float32),
        grid=(m_pad // tm,),
        in_specs=[_row_spec(tm, ncp),
                  pl.BlockSpec((tm, ks_pad), lambda i: (i, 0)),
                  pl.BlockSpec((ks_pad, ncp), lambda i: (0, 0)),
                  _vec_spec(ncp), _vec_spec(ncp), _vec_spec(ncp), _vec_spec(ncp)],
        out_specs=_row_spec(tm, ncp),
        compiler_params=_elementwise_params(),
    )(y2, a_s, w_s, s2, t2, ss, ts)


def _apply_tail_identity(y2, res, s2, t2, tm):
    m_pad, ncp = y2.shape
    return pl.pallas_call(
        tail_identity_kernel,
        out_shape=jax.ShapeDtypeStruct((m_pad, ncp), jnp.float32),
        grid=(m_pad // tm,),
        in_specs=[_row_spec(tm, ncp), _row_spec(tm, ncp),
                  _vec_spec(ncp), _vec_spec(ncp)],
        out_specs=_row_spec(tm, ncp),
        compiler_params=_elementwise_params(),
    )(y2, res, s2, t2)


# ----------------------------------------------------------------------------
# BN statistics reduction (tiny, host-JAX): partial (sum, sumsq) -> affine
# ----------------------------------------------------------------------------
def _bn_affine(ps, gamma, beta, m_true, ncp):
    s = jnp.sum(ps, axis=0)                              # (2, ncp)
    mean = s[0] / m_true                                 # zero-padded rows add 0
    var = jnp.maximum(s[1] / m_true - mean * mean, 0.0)  # biased batch variance
    inv = jax.lax.rsqrt(var + EPS)
    scale = _pad1d(gamma, ncp) * inv                     # padded channels -> 0
    shift = _pad1d(beta, ncp) - mean * scale
    return scale.reshape(1, ncp), shift.reshape(1, ncp)


# ----------------------------------------------------------------------------
# im2col glue (plain JAX)
# ----------------------------------------------------------------------------
def _im2col(x_nhwc, k, stride, pad):
    """(N,H,W,C) -> (N*Ho*Wo, k*k*C); patch channel order = (ky, kx, c)."""
    n, h, w, c = x_nhwc.shape
    xp = jnp.pad(x_nhwc, ((0, 0), (pad, pad), (pad, pad), (0, 0)))
    ho = (h + 2 * pad - k) // stride + 1
    wo = (w + 2 * pad - k) // stride + 1
    patches = []
    for ky in range(k):
        for kx in range(k):
            patches.append(
                xp[:, ky:ky + stride * ho:stride, kx:kx + stride * wo:stride, :])
    a = jnp.concatenate(patches, axis=-1)          # (N, Ho, Wo, k*k*C)
    return a.reshape(n * ho * wo, k * k * c), ho, wo


# ----------------------------------------------------------------------------
# Parameters + forward
# ----------------------------------------------------------------------------
def init_basic_block_params(key, in_planes, planes, stride):
    ks = jax.random.split(key, 9)
    p = {
        "w1": jax.random.normal(ks[0], (3, 3, in_planes, planes), jnp.float32) * 0.2,
        "g1": 1.0 + 0.1 * jax.random.normal(ks[1], (planes,), jnp.float32),
        "b1": 0.1 * jax.random.normal(ks[2], (planes,), jnp.float32),
        "w2": jax.random.normal(ks[3], (3, 3, planes, planes), jnp.float32) * 0.2,
        "g2": 1.0 + 0.1 * jax.random.normal(ks[4], (planes,), jnp.float32),
        "b2": 0.1 * jax.random.normal(ks[5], (planes,), jnp.float32),
    }
    if stride != 1 or in_planes != planes:
        p["ws"] = jax.random.normal(ks[6], (1, 1, in_planes, planes), jnp.float32) * 0.2
        p["gs"] = 1.0 + 0.1 * jax.random.normal(ks[7], (planes,), jnp.float32)
        p["bs"] = 0.1 * jax.random.normal(ks[8], (planes,), jnp.float32)
    return p


@functools.partial(jax.jit, static_argnames=("stride",))
def basic_block_forward(x_nchw, params, stride):
    """PyTorch-equivalent BasicBlock.forward. Input / output: NCHW float32."""
    x = jnp.transpose(x_nchw, (0, 2, 3, 1)).astype(jnp.float32)   # NCHW -> NHWC
    n, h, w, cin = x.shape
    planes = params["w1"].shape[-1]
    has_shortcut = (stride != 1) or (cin != planes)
    ncp = _round_up(planes, LANE)                 # lane-dense output channel width

    # ---- conv1 (3x3, stride, pad 1) + bn1 + relu --------------------------
    a1, ho, wo = _im2col(x, 3, stride, 1)
    m = n * ho * wo
    tm, m_pad = _m_tiling(m)
    k1_pad = _k_pad(a1.shape[1])
    a1p = _pad2d(a1, m_pad, k1_pad).astype(jnp.bfloat16)
    w1p = _pad2d(params["w1"].reshape(-1, planes), k1_pad, ncp).astype(jnp.bfloat16)
    y1, ps1 = _matmul_stats(a1p, w1p, tm)                  # y1: bf16
    sc1, sh1 = _bn_affine(ps1, params["g1"], params["b1"], m, ncp)
    out1p = _apply_bn_relu(y1, sc1, sh1, tm)               # bf16: feeds conv2

    # ---- conv2 (3x3, stride 1, pad 1) + bn2 -------------------------------
    # TODO(synk): fuse the 3x3 im2col of out1 into the matmul kernel itself
    # (halo'd blocks + 9 shifted dot-accumulations) to remove the 9x HBM
    # blow-up of patch matrices; kept as XLA glue here.
    # Slices below are no-ops when m == m_pad / planes is a multiple of 128.
    out1 = out1p[:m, :planes].reshape(n, ho, wo, planes)
    a2, _, _ = _im2col(out1, 3, 1, 1)
    k2_pad = _k_pad(a2.shape[1])
    a2p = _pad2d(a2, m_pad, k2_pad)                        # already bf16
    w2p = _pad2d(params["w2"].reshape(-1, planes), k2_pad, ncp).astype(jnp.bfloat16)
    y2, ps2 = _matmul_stats(a2p, w2p, tm)                  # y2: bf16
    sc2, sh2 = _bn_affine(ps2, params["g2"], params["b2"], m, ncp)

    # ---- shortcut + add + relu --------------------------------------------
    if has_shortcut:
        a_s = x[:, ::stride, ::stride, :].reshape(m, cin)  # 1x1 conv "im2col"
        ks_pad = _round_up(cin, LANE)
        a_sp = _pad2d(a_s, m_pad, ks_pad).astype(jnp.bfloat16)
        wsp = _pad2d(params["ws"].reshape(cin, planes), ks_pad, ncp).astype(jnp.bfloat16)
        pss = _shortcut_stats(a_sp, wsp, tm)               # stats only, no ys in HBM
        scs, shs = _bn_affine(pss, params["gs"], params["bs"], m, ncp)
        out_flat = _apply_tail_shortcut(y2, a_sp, wsp, sc2, sh2, scs, shs, tm)
    else:
        res = _pad2d(x.reshape(m, cin), m_pad, ncp).astype(jnp.bfloat16)
        out_flat = _apply_tail_identity(y2, res, sc2, sh2, tm)

    out = out_flat[:m, :planes].reshape(n, ho, wo, planes)
    return jnp.transpose(out, (0, 3, 1, 2))                # NHWC -> NCHW


# ----------------------------------------------------------------------------
# Pure-JAX reference (lax.conv) for correctness checking
# ----------------------------------------------------------------------------
def _ref_forward(x_nchw, params, stride):
    x = jnp.transpose(x_nchw, (0, 2, 3, 1))
    cin = x.shape[-1]
    planes = params["w1"].shape[-1]
    has_shortcut = (stride != 1) or (cin != planes)

    def conv(v, w, s, pad):
        return jax.lax.conv_general_dilated(
            v, w, (s, s), ((pad, pad), (pad, pad)),
            dimension_numbers=("NHWC", "HWIO", "NHWC"),
            precision=jax.lax.Precision.HIGHEST)

    def bn(y, g, b):
        mean = y.mean((0, 1, 2), keepdims=True)
        var = jnp.square(y - mean).mean((0, 1, 2), keepdims=True)
        return (y - mean) * jax.lax.rsqrt(var + EPS) * g + b

    out = jax.nn.relu(bn(conv(x, params["w1"], stride, 1), params["g1"], params["b1"]))
    out = bn(conv(out, params["w2"], 1, 1), params["g2"], params["b2"])
    sc = (bn(conv(x, params["ws"], stride, 0), params["gs"], params["bs"])
          if has_shortcut else x)
    out = jax.nn.relu(out + sc)
    return jnp.transpose(out, (0, 3, 1, 2))


# ----------------------------------------------------------------------------
if __name__ == "__main__":
    key = jax.random.PRNGKey(0)
    kx, kp1, kp2 = jax.random.split(key, 3)

    # Case A: downsampling block with 1x1-conv shortcut (4 -> 8 planes, stride 2)
    x = jax.random.normal(kx, (2, 4, 16, 16), jnp.float32)        # NCHW
    params_a = init_basic_block_params(kp1, in_planes=4, planes=8, stride=2)
    out_a = jax.block_until_ready(basic_block_forward(x, params_a, stride=2))
    ref_a = _ref_forward(x, params_a, 2)
    assert out_a.shape == (2, 8, 8, 8), out_a.shape
    # bf16 matmul inputs + bf16 intermediate (Y) storage, f32 accumulation
    # -> looser tolerance than pure f32.
    err_a = float(jnp.max(jnp.abs(out_a - ref_a)))
    assert jnp.allclose(out_a, ref_a, rtol=5e-2, atol=7.5e-2), (
        "case A mismatch, max|err|=%f" % err_a)

    # Case B: identity-shortcut block (4 -> 4 planes, stride 1)
    params_b = init_basic_block_params(kp2, in_planes=4, planes=4, stride=1)
    out_b = jax.block_until_ready(basic_block_forward(x, params_b, stride=1))
    ref_b = _ref_forward(x, params_b, 1)
    assert out_b.shape == (2, 4, 16, 16), out_b.shape
    err_b = float(jnp.max(jnp.abs(out_b - ref_b)))
    assert jnp.allclose(out_b, ref_b, rtol=5e-2, atol=7.5e-2), (
        "case B mismatch, max|err|=%f" % err_b)

    print("KERNEL_OK")
</pallas_src>

<mosaic_0001>
module attributes {stable_mosaic.version = 11 : i64} {
  func.func @matmul_stats_1k_kernel(%arg0: i32, %arg1: memref<128x128xbf16, #tpu.memory_space<vmem>>, %arg2: memref<128x128xbf16, #tpu.memory_space<vmem>>, %arg3: memref<128x128xbf16, #tpu.memory_space<vmem>>, %arg4: memref<1x2x128xf32, #tpu.memory_space<vmem>>) attributes {dimension_semantics = [#tpu.dimension_semantics<parallel>], iteration_bounds = array<i64: 1>, scalar_prefetch = 0 : i64, scratch_operands = 0 : i64, tpu.core_type = #tpu.core_type<tc>, window_params = [{transform_indices = @transform_0, window_bounds = array<i64: 128, 128>}, {pipeline_mode = #tpu.pipeline_mode<synchronous>, transform_indices = @transform_1, window_bounds = array<i64: 128, 128>}, {transform_indices = @transform_2, window_bounds = array<i64: 128, 128>}, {transform_indices = @transform_3, window_bounds = array<i64: 1, 2, 128>}]} {
    %c0 = arith.constant 0 : index
    %c0_0 = arith.constant 0 : index
    %0 = vector.load %arg1[%c0, %c0_0] : memref<128x128xbf16, #tpu.memory_space<vmem>>, vector<128x128xbf16>
    %c0_1 = arith.constant 0 : index
    %c0_2 = arith.constant 0 : index
    %1 = vector.load %arg2[%c0_1, %c0_2] : memref<128x128xbf16, #tpu.memory_space<vmem>>, vector<128x128xbf16>
    %cst = arith.constant dense<0.000000e+00> : vector<128x128xf32>
    %2 = tpu.matmul %0, %1, %cst {dimension_numbers = #tpu.dot_dimension_numbers<[1], [0], [0], [1], [0, 0, 1, 1], [], []>} : vector<128x128xbf16>, vector<128x128xbf16>, vector<128x128xf32> -> vector<128x128xf32>
    %3 = arith.truncf %2 : vector<128x128xf32> to vector<128x128xbf16>
    %c0_3 = arith.constant 0 : index
    %c0_4 = arith.constant 0 : index
    %4 = vector.load %arg3[%c0_3, %c0_4] : memref<128x128xbf16, #tpu.memory_space<vmem>>, vector<128x128xbf16>
    tpu.vector_store %arg3[%c0_3, %c0_4], %3 {strides = array<i32>} : memref<128x128xbf16, #tpu.memory_space<vmem>>, vector<128x128xbf16>,
    %cst_5 = arith.constant dense<0.000000e+00> : vector<128xf32>
    %5 = vector.multi_reduction <add>, %2, %cst_5 [0] : vector<128x128xf32> to vector<128xf32>
    %6 = vector.shape_cast %5 : vector<128xf32> to vector<1x128xf32>
    %7 = arith.mulf %2, %2 : vector<128x128xf32>
    %cst_6 = arith.constant dense<0.000000e+00> : vector<128xf32>
    %8 = vector.multi_reduction <add>, %7, %cst_6 [0] : vector<128x128xf32> to vector<128xf32>
    %9 = vector.shape_cast %8 : vector<128xf32> to vector<1x128xf32>
    %10 = tpu.concatenate %6, %9 in 0 : vector<1x128xf32>, vector<1x128xf32> -> vector<2x128xf32>
    %11 = vector.shape_cast %10 : vector<2x128xf32> to vector<1x2x128xf32>
    %c0_7 = arith.constant 0 : index
    %c0_8 = arith.constant 0 : index
    %c0_9 = arith.constant 0 : index
    %12 = vector.load %arg4[%c0_7, %c0_8, %c0_9] : memref<1x2x128xf32, #tpu.memory_space<vmem>>, vector<1x2x128xf32>
    tpu.vector_store %arg4[%c0_7, %c0_8, %c0_9], %11 {strides = array<i32>} : memref<1x2x128xf32, #tpu.memory_space<vmem>>, vector<1x2x128xf32>,
    return
  }
  func.func @transform_0(%arg0: i32) -> (i32, i32) {
    %c0_i32 = arith.constant 0 : i32
    %c0_i32_0 = arith.constant 0 : i32
    return %arg0, %c0_i32 : i32, i32
  }
  func.func @transform_1(%arg0: i32) -> (i32, i32) {
    %c0_i32 = arith.constant 0 : i32
    %c0_i32_0 = arith.constant 0 : i32
    %c0_i32_1 = arith.constant 0 : i32
    return %c0_i32, %c0_i32_0 : i32, i32
  }
  func.func @transform_2(%arg0: i32) -> (i32, i32) {
    %c0_i32 = arith.constant 0 : i32
    %c0_i32_0 = arith.constant 0 : i32
    return %arg0, %c0_i32 : i32, i32
  }
  func.func @transform_3(%arg0: i32) -> (i32, i32, i32) {
    %c0_i32 = arith.constant 0 : i32
    %c0_i32_0 = arith.constant 0 : i32
    %c0_i32_1 = arith.constant 0 : i32
    return %arg0, %c0_i32, %c0_i32_0 : i32, i32, i32
  }
}

module attributes {stable_mosaic.version = 11 : i64} {
  func.func @bn_relu_kernel(%arg0: i32, %arg1: memref<128x128xbf16, #tpu.memory_space<vmem>>, %arg2: memref<1x128xf32, #tpu.memory_space<vmem>>, %arg3: memref<1x128xf32, #tpu.memory_space<vmem>>, %arg4: memref<128x128xbf16, #tpu.memory_space<vmem>>) attributes {dimension_semantics = [#tpu.dimension_semantics<parallel>], iteration_bounds = array<i64: 1>, scalar_prefetch = 0 : i64, scratch_operands = 0 : i64, tpu.core_type = #tpu.core_type<tc>, window_params = [{transform_indices = @transform_0, window_bounds = array<i64: 128, 128>}, {pipeline_mode = #tpu.pipeline_mode<synchronous>, transform_indices = @transform_1, window_bounds = array<i64: 1, 128>}, {pipeline_mode = #tpu.pipeline_mode<synchronous>, transform_indices = @transform_2, window_bounds = array<i64: 1, 128>}, {transform_indices = @transform_3, window_bounds = array<i64: 128, 128>}]} {
    %c0 = arith.constant 0 : index
    %c0_0 = arith.constant 0 : index
    %0 = vector.load %arg1[%c0, %c0_0] : memref<128x128xbf16, #tpu.memory_space<vmem>>, vector<128x128xbf16>
    %1 = arith.extf %0 : vector<128x128xbf16> to vector<128x128xf32>
    %c0_1 = arith.constant 0 : index
    %c0_2 = arith.constant 0 : index
    %2 = vector.load %arg2[%c0_1, %c0_2] : memref<1x128xf32, #tpu.memory_space<vmem>>, vector<1x128xf32>
    %3 = vector.broadcast %2 : vector<1x128xf32> to vector<128x128xf32>
    %4 = arith.mulf %1, %3 : vector<128x128xf32>
    %c0_3 = arith.constant 0 : index
    %c0_4 = arith.constant 0 : index
    %5 = vector.load %arg3[%c0_3, %c0_4] : memref<1x128xf32, #tpu.memory_space<vmem>>, vector<1x128xf32>
    %6 = vector.broadcast %5 : vector<1x128xf32> to vector<128x128xf32>
    %7 = arith.addf %4, %6 : vector<128x128xf32>
    %cst = arith.constant 0.000000e+00 : f32
    %8 = vector.broadcast %cst : f32 to vector<128x128xf32>
    %9 = arith.maximumf %7, %8 : vector<128x128xf32>
    %10 = arith.truncf %9 : vector<128x128xf32> to vector<128x128xbf16>
    %c0_5 = arith.constant 0 : index
    %c0_6 = arith.constant 0 : index
    %11 = vector.load %arg4[%c0_5, %c0_6] : memref<128x128xbf16, #tpu.memory_space<vmem>>, vector<128x128xbf16>
    tpu.vector_store %arg4[%c0_5, %c0_6], %10 {strides = array<i32>} : memref<128x128xbf16, #tpu.memory_space<vmem>>, vector<128x128xbf16>,
    return
  }
  func.func @transform_0(%arg0: i32) -> (i32, i32) {
    %c0_i32 = arith.constant 0 : i32
    %c0_i32_0 = arith.constant 0 : i32
    return %arg0, %c0_i32 : i32, i32
  }
  func.func @transform_1(%arg0: i32) -> (i32, i32) {
    %c0_i32 = arith.constant 0 : i32
    %c0_i32_0 = arith.constant 0 : i32
    %c0_i32_1 = arith.constant 0 : i32
    return %c0_i32, %c0_i32_0 : i32, i32
  }
  func.func @transform_2(%arg0: i32) -> (i32, i32) {
    %c0_i32 = arith.constant 0 : i32
    %c0_i32_0 = arith.constant 0 : i32
    %c0_i32_1 = arith.constant 0 : i32
    return %c0_i32, %c0_i32_0 : i32, i32
  }
  func.func @transform_3(%arg0: i32) -> (i32, i32) {
    %c0_i32 = arith.constant 0 : i32
    %c0_i32_0 = arith.constant 0 : i32
    return %arg0, %c0_i32 : i32, i32
  }
}

module attributes {stable_mosaic.version = 11 : i64} {
  func.func @tail_shortcut_kernel(%arg0: i32, %arg1: memref<128x128xbf16, #tpu.memory_space<vmem>>, %arg2: memref<128x128xbf16, #tpu.memory_space<vmem>>, %arg3: memref<128x128xbf16, #tpu.memory_space<vmem>>, %arg4: memref<1x128xf32, #tpu.memory_space<vmem>>, %arg5: memref<1x128xf32, #tpu.memory_space<vmem>>, %arg6: memref<1x128xf32, #tpu.memory_space<vmem>>, %arg7: memref<1x128xf32, #tpu.memory_space<vmem>>, %arg8: memref<128x128xf32, #tpu.memory_space<vmem>>) attributes {dimension_semantics = [#tpu.dimension_semantics<parallel>], iteration_bounds = array<i64: 1>, scalar_prefetch = 0 : i64, scratch_operands = 0 : i64, tpu.core_type = #tpu.core_type<tc>, window_params = [{transform_indices = @transform_0, window_bounds = array<i64: 128, 128>}, {transform_indices = @transform_1, window_bounds = array<i64: 128, 128>}, {pipeline_mode = #tpu.pipeline_mode<synchronous>, transform_indices = @transform_2, window_bounds = array<i64: 128, 128>}, {pipeline_mode = #tpu.pipeline_mode<synchronous>, transform_indices = @transform_3, window_bounds = array<i64: 1, 128>}, {pipeline_mode = #tpu.pipeline_mode<synchronous>, transform_indices = @transform_4, window_bounds = array<i64: 1, 128>}, {pipeline_mode = #tpu.pipeline_mode<synchronous>, transform_indices = @transform_5, window_bounds = array<i64: 1, 128>}, {pipeline_mode = #tpu.pipeline_mode<synchronous>, transform_indices = @transform_6, window_bounds = array<i64: 1, 128>}, {transform_indices = @transform_7, window_bounds = array<i64: 128, 128>}]} {
    %c0 = arith.constant 0 : index
    %c0_0 = arith.constant 0 : index
    %0 = vector.load %arg2[%c0, %c0_0] : memref<128x128xbf16, #tpu.memory_space<vmem>>, vector<128x128xbf16>
    %c0_1 = arith.constant 0 : index
    %c0_2 = arith.constant 0 : index
    %1 = vector.load %arg3[%c0_1, %c0_2] : memref<128x128xbf16, #tpu.memory_space<vmem>>, vector<128x128xbf16>
    %cst = arith.constant dense<0.000000e+00> : vector<128x128xf32>
    %2 = tpu.matmul %0, %1, %cst {dimension_numbers = #tpu.dot_dimension_numbers<[1], [0], [0], [1], [0, 0, 1, 1], [], []>} : vector<128x128xbf16>, vector<128x128xbf16>, vector<128x128xf32> -> vector<128x128xf32>
    %c0_3 = arith.constant 0 : index
    %c0_4 = arith.constant 0 : index
    %3 = vector.load %arg1[%c0_3, %c0_4] : memref<128x128xbf16, #tpu.memory_space<vmem>>, vector<128x128xbf16>
    %4 = arith.extf %3 : vector<128x128xbf16> to vector<128x128xf32>
    %c0_5 = arith.constant 0 : index
    %c0_6 = arith.constant 0 : index
    %5 = vector.load %arg4[%c0_5, %c0_6] : memref<1x128xf32, #tpu.memory_space<vmem>>, vector<1x128xf32>
    %6 = vector.broadcast %5 : vector<1x128xf32> to vector<128x128xf32>
    %7 = arith.mulf %4, %6 : vector<128x128xf32>
    %c0_7 = arith.constant 0 : index
    %c0_8 = arith.constant 0 : index
    %8 = vector.load %arg5[%c0_7, %c0_8] : memref<1x128xf32, #tpu.memory_space<vmem>>, vector<1x128xf32>
    %9 = vector.broadcast %8 : vector<1x128xf32> to vector<128x128xf32>
    %10 = arith.addf %7, %9 : vector<128x128xf32>
    %c0_9 = arith.constant 0 : index
    %c0_10 = arith.constant 0 : index
    %11 = vector.load %arg6[%c0_9, %c0_10] : memref<1x128xf32, #tpu.memory_space<vmem>>, vector<1x128xf32>
    %12 = vector.broadcast %11 : vector<1x128xf32> to vector<128x128xf32>
    %13 = arith.mulf %2, %12 : vector<128x128xf32>
    %14 = arith.addf %10, %13 : vector<128x128xf32>
    %c0_11 = arith.constant 0 : index
    %c0_12 = arith.constant 0 : index
    %15 = vector.load %arg7[%c0_11, %c0_12] : memref<1x128xf32, #tpu.memory_space<vmem>>, vector<1x128xf32>
    %16 = vector.broadcast %15 : vector<1x128xf32> to vector<128x128xf32>
    %17 = arith.addf %14, %16 : vector<128x128xf32>
    %cst_13 = arith.constant 0.000000e+00 : f32
    %18 = vector.broadcast %cst_13 : f32 to vector<128x128xf32>
    %19 = arith.maximumf %17, %18 : vector<128x128xf32>
    %c0_14 = arith.constant 0 : index
    %c0_15 = arith.constant 0 : index
    %20 = vector.load %arg8[%c0_14, %c0_15] : memref<128x128xf32, #tpu.memory_space<vmem>>, vector<128x128xf32>
    tpu.vector_store %arg8[%c0_14, %c0_15], %19 {strides = array<i32>} : memref<128x128xf32, #tpu.memory_space<vmem>>, vector<128x128xf32>,
    return
  }
  func.func @transform_0(%arg0: i32) -> (i32, i32) {
    %c0_i32 = arith.constant 0 : i32
    %c0_i32_0 = arith.constant 0 : i32
    return %arg0, %c0_i32 : i32, i32
  }
  func.func @transform_1(%arg0: i32) -> (i32, i32) {
    %c0_i32 = arith.constant 0 : i32
    %c0_i32_0 = arith.constant 0 : i32
    return %arg0, %c0_i32 : i32, i32
  }
  func.func @transform_2(%arg0: i32) -> (i32, i32) {
    %c0_i32 = arith.constant 0 : i32
    %c0_i32_0 = arith.constant 0 : i32
    %c0_i32_1 = arith.constant 0 : i32
    return %c0_i32, %c0_i32_0 : i32, i32
  }
  func.func @transform_3(%arg0: i32) -> (i32, i32) {
    %c0_i32 = arith.constant 0 : i32
    %c0_i32_0 = arith.constant 0 : i32
    %c0_i32_1 = arith.constant 0 : i32
    return %c0_i32, %c0_i32_0 : i32, i32
  }
  func.func @transform_4(%arg0: i32) -> (i32, i32) {
    %c0_i32 = arith.constant 0 : i32
    %c0_i32_0 = arith.constant 0 : i32
    %c0_i32_1 = arith.constant 0 : i32
    return %c0_i32, %c0_i32_0 : i32, i32
  }
  func.func @transform_5(%arg0: i32) -> (i32, i32) {
    %c0_i32 = arith.constant 0 : i32
    %c0_i32_0 = arith.constant 0 : i32
    %c0_i32_1 = arith.constant 0 : i32
    return %c0_i32, %c0_i32_0 : i32, i32
  }
  func.func @transform_6(%arg0: i32) -> (i32, i32) {
    %c0_i32 = arith.constant 0 : i32
    %c0_i32_0 = arith.constant 0 : i32
    %c0_i32_1 = arith.constant 0 : i32
    return %c0_i32, %c0_i32_0 : i32, i32
  }
  func.func @transform_7(%arg0: i32) -> (i32, i32) {
    %c0_i32 = arith.constant 0 : i32
    %c0_i32_0 = arith.constant 0 : i32
    return %arg0, %c0_i32 : i32, i32
  }
}

module attributes {stable_mosaic.version = 11 : i64} {
  func.func @matmul_statsonly_kernel(%arg0: i32, %arg1: memref<128x128xbf16, #tpu.memory_space<vmem>>, %arg2: memref<128x128xbf16, #tpu.memory_space<vmem>>, %arg3: memref<1x2x128xf32, #tpu.memory_space<vmem>>) attributes {dimension_semantics = [#tpu.dimension_semantics<parallel>], iteration_bounds = array<i64: 1>, scalar_prefetch = 0 : i64, scratch_operands = 0 : i64, tpu.core_type = #tpu.core_type<tc>, window_params = [{transform_indices = @transform_0, window_bounds = array<i64: 128, 128>}, {pipeline_mode = #tpu.pipeline_mode<synchronous>, transform_indices = @transform_1, window_bounds = array<i64: 128, 128>}, {transform_indices = @transform_2, window_bounds = array<i64: 1, 2, 128>}]} {
    %c0 = arith.constant 0 : index
    %c0_0 = arith.constant 0 : index
    %0 = vector.load %arg1[%c0, %c0_0] : memref<128x128xbf16, #tpu.memory_space<vmem>>, vector<128x128xbf16>
    %c0_1 = arith.constant 0 : index
    %c0_2 = arith.constant 0 : index
    %1 = vector.load %arg2[%c0_1, %c0_2] : memref<128x128xbf16, #tpu.memory_space<vmem>>, vector<128x128xbf16>
    %cst = arith.constant dense<0.000000e+00> : vector<128x128xf32>
    %2 = tpu.matmul %0, %1, %cst {dimension_numbers = #tpu.dot_dimension_numbers<[1], [0], [0], [1], [0, 0, 1, 1], [], []>} : vector<128x128xbf16>, vector<128x128xbf16>, vector<128x128xf32> -> vector<128x128xf32>
    %cst_3 = arith.constant dense<0.000000e+00> : vector<128xf32>
    %3 = vector.multi_reduction <add>, %2, %cst_3 [0] : vector<128x128xf32> to vector<128xf32>
    %4 = vector.shape_cast %3 : vector<128xf32> to vector<1x128xf32>
    %5 = arith.mulf %2, %2 : vector<128x128xf32>
    %cst_4 = arith.constant dense<0.000000e+00> : vector<128xf32>
    %6 = vector.multi_reduction <add>, %5, %cst_4 [0] : vector<128x128xf32> to vector<128xf32>
    %7 = vector.shape_cast %6 : vector<128xf32> to vector<1x128xf32>
    %8 = tpu.concatenate %4, %7 in 0 : vector<1x128xf32>, vector<1x128xf32> -> vector<2x128xf32>
    %9 = vector.shape_cast %8 : vector<2x128xf32> to vector<1x2x128xf32>
    %c0_5 = arith.constant 0 : index
    %c0_6 = arith.constant 0 : index
    %c0_7 = arith.constant 0 : index
    %10 = vector.load %arg3[%c0_5, %c0_6, %c0_7] : memref<1x2x128xf32, #tpu.memory_space<vmem>>, vector<1x2x128xf32>
    tpu.vector_store %arg3[%c0_5, %c0_6, %c0_7], %9 {strides = array<i32>} : memref<1x2x128xf32, #tpu.memory_space<vmem>>, vector<1x2x128xf32>,
    return
  }
  func.func @transform_0(%arg0: i32) -> (i32, i32) {
    %c0_i32 = arith.constant 0 : i32
    %c0_i32_0 = arith.constant 0 : i32
    return %arg0, %c0_i32 : i32, i32
  }
  func.func @transform_1(%arg0: i32) -> (i32, i32) {
    %c0_i32 = arith.constant 0 : i32
    %c0_i32_0 = arith.constant 0 : i32
    %c0_i32_1 = arith.constant 0 : i32
    return %c0_i32, %c0_i32_0 : i32, i32
  }
  func.func @transform_2(%arg0: i32) -> (i32, i32, i32) {
    %c0_i32 = arith.constant 0 : i32
    %c0_i32_0 = arith.constant 0 : i32
    %c0_i32_1 = arith.constant 0 : i32
    return %arg0, %c0_i32, %c0_i32_0 : i32, i32, i32
  }
}

</mosaic_0001>

<bundles_post_ra>
// kernel: basic_block_forward.5
= control target key start
LH: loop header
LB: loop body
LE: loop exit
PB: predicated region body
PF: predicated region fallthrough
CT: control target
= control target key end

     0   :  { %vm280_vm0 = vcmask 1040384   ;;  %s543_s1 = inlined_call_operand.vmem [shape: bf16[128,128], index: 1, kind: input, shape index: {}]   ;;  %s544_s0 = inlined_call_operand.vmem [shape: bf16[128,128], index: 0, kind: input, shape index: {}]   ;;  %s545_s2 = inlined_call_operand.vmem [shape: bf16[128,128], index: 2, kind: output, shape index: {0}]   ;;  %s546_s3 = inlined_call_operand.vmem [shape: f32[1,2,128], index: 3, kind: output, shape index: {1}]  }
   0x1   :  { %v370_v0 = vld [vmem:[%s543_s1 + $0x38] sm:$0xff]  ;;  %v369_v1 = vld [vmem:[%s543_s1 + $0x30] sm:$0xff]  ;;  %v368_v2 = vld [vmem:[%s543_s1 + $0x28] sm:$0xff] }
   0x2   :  { %141 = vmatpush.bf16.msra.mxu0 %v370_v0  ;;  %418 = vmatpush.bf16.msra.mxu1 %v370_v0  ;;  %v367_v3 = vld [vmem:[%s543_s1 + $0x20] sm:$0xff]  ;;  %v366_v4 = vld [vmem:[%s543_s1 + $0x18] sm:$0xff]  ;;  %v365_v5 = vld [vmem:[%s543_s1 + $0x10] sm:$0xff] }
   0x3   :  { %419 = vmatpush.bf16.msra.mxu2 %v370_v0  ;;  %420 = vmatpush.bf16.msra.mxu3 %v370_v0  ;;  %v364_v6 = vld [vmem:[%s543_s1 + $0x8] sm:$0xff]  ;;  %v363_v7 = vld [vmem:[%s543_s1] sm:$0xff]  ;;  %v357_v9 = vld [vmem:[%s544_s0 + $0x10] sm:$0xff] }
   0x4   :  { %v355_v8 = vld [vmem:[%s544_s0] sm:$0xff]  ;;  %v361_v11 = vld [vmem:[%s544_s0 + $0x30] sm:$0xff]  ;;  %v356_v12 = vld [vmem:[%s544_s0 + $0x8] sm:$0xff] }
   0x5   :  { %v359_v10 = vld [vmem:[%s544_s0 + $0x20] sm:$0xff]  ;;  %v358_v13 = vld [vmem:[%s544_s0 + $0x18] sm:$0xff]  ;;  %v360_v14 = vld [vmem:[%s544_s0 + $0x28] sm:$0xff] }
   0x6   :  { %142 = vmatpush.bf16.msra.mxu0 %v369_v1  ;;  %421 = vmatpush.bf16.msra.mxu1 %v369_v1  ;;  %v362_v15 = vld [vmem:[%s544_s0 + $0x38] sm:$0xff] }
   0x7   :  { %422 = vmatpush.bf16.msra.mxu2 %v369_v1  ;;  %423 = vmatpush.bf16.msra.mxu3 %v369_v1 }
   0xa   :  { %143 = vmatpush.bf16.msra.mxu0 %v368_v2  ;;  %424 = vmatpush.bf16.msra.mxu1 %v368_v2 }
   0xb   :  { %425 = vmatpush.bf16.msra.mxu2 %v368_v2  ;;  %426 = vmatpush.bf16.msra.mxu3 %v368_v2 }
   0xe   :  { %144 = vmatpush.bf16.msra.mxu0 %v367_v3  ;;  %427 = vmatpush.bf16.msra.mxu1 %v367_v3 }
   0xf   :  { %428 = vmatpush.bf16.msra.mxu2 %v367_v3  ;;  %429 = vmatpush.bf16.msra.mxu3 %v367_v3 }
  0x12   :  { %145 = vmatpush.bf16.msra.mxu0 %v366_v4  ;;  %430 = vmatpush.bf16.msra.mxu1 %v366_v4 }
  0x13   :  { %431 = vmatpush.bf16.msra.mxu2 %v366_v4  ;;  %432 = vmatpush.bf16.msra.mxu3 %v366_v4 }
  0x16   :  { %146 = vmatpush.bf16.msra.mxu0 %v365_v5  ;;  %433 = vmatpush.bf16.msra.mxu1 %v365_v5 }
  0x17   :  { %434 = vmatpush.bf16.msra.mxu2 %v365_v5  ;;  %435 = vmatpush.bf16.msra.mxu3 %v365_v5 }
  0x1a   :  { %147 = vmatpush.bf16.msra.mxu0 %v364_v6  ;;  %436 = vmatpush.bf16.msra.mxu1 %v364_v6 }
  0x1b   :  { %437 = vmatpush.bf16.msra.mxu2 %v364_v6  ;;  %438 = vmatpush.bf16.msra.mxu3 %v364_v6 }
  0x1e   :  { %148 = vmatpush.bf16.msra.mxu0 %v363_v7  ;;  %439 = vmatpush.bf16.msra.mxu1 %v363_v7 }
  0x1f   :  { %440 = vmatpush.bf16.msra.mxu2 %v363_v7  ;;  %441 = vmatpush.bf16.msra.mxu3 %v363_v7 }
  0x21   :  { %149 = vmatmul.bf16.vlgmr.msra.gmra.mxu0 %v355_v8  ;;  %159 = vmatmul.bf16.vlgmr.msra.gmra.mxu1 %v357_v9 }
  0x22   :  { %169 = vmatmul.bf16.vlgmr.msra.gmra.mxu2 %v359_v10  ;;  %179 = vmatmul.bf16.vlgmr.msra.gmra.mxu3 %v361_v11 }
  0x31   :  { %154 = vmatmul.bf16.gmra.mxu0 %v356_v12  ;;  %164 = vmatmul.bf16.gmra.mxu1 %v358_v13 }
  0x32   :  { %174 = vmatmul.bf16.gmra.mxu2 %v360_v14  ;;  %184 = vmatmul.bf16.gmra.mxu3 %v362_v15 }
  0x9e   :  { %v150_v16 = vpop.f32.mrf.mxu0  ;;  %v160_v17 = vpop.f32.mrf.mxu1 }
  0x9f   :  { %v243_v31 = vmul.f32 %v150_v16, %v150_v16  ;;  %v247_v45 = vmul.f32 %v160_v17, %v160_v17 }
  0xa5   :  { %v170_v18 = vpop.f32.mrf.mxu2  ;;  %v510_v19 = vpop.f32.mrf.mxu3 }
  0xa6   :  { %v152_v20 = vpop.f32.mrf.mxu0  ;;  %v162_v21 = vpop.f32.mrf.mxu1  ;;  %v251_v61 = vmul.f32 %v170_v18, %v170_v18  ;;  %v255_v9 = vmul.f32 %v510_v19, %v510_v19 }
  0xa7   :  { %v374_v22 = vpack.c.bf16 %v152_v20, %v150_v16  ;;  %v384_v23 = vpack.c.bf16 %v162_v21, %v160_v17  ;;  %v244_v30 = vmul.f32 %v152_v20, %v152_v20  ;;  %v222_v33 = vadd.f32 %v152_v20, %v150_v16 }
  0xa8   :  { %v248_v48 = vmul.f32 %v162_v21, %v162_v21 }
  0xa9   :  { %375 = vst [vmem:[%s545_s2] sm:$0xff] %v374_v22   ;;  %v259_v34 = vadd.f32 %v244_v30, %v243_v31 }
  0xaa   :  { %412 = vst [vmem:[%s545_s2 + $0x10] sm:$0xff] %v384_v23  }
  0xad   :  { %v172_v24 = vpop.f32.mrf.mxu2  ;;  %v182_v25 = vpop.f32.mrf.mxu3 }
  0xae   :  { %v155_v26 = vpop.f32.mrf.mxu0  ;;  %v165_v27 = vpop.f32.mrf.mxu1  ;;  %v394_v28 = vpack.c.bf16 %v172_v24, %v170_v18  ;;  %v404_v29 = vpack.c.bf16 %v182_v25, %v510_v19  ;;  %v252_v0 = vmul.f32 %v172_v24, %v172_v24  ;;  %v256_v12 = vmul.f32 %v182_v25, %v182_v25 }
  0xaf   :  { %v245_v32 = vmul.f32 %v155_v26, %v155_v26  ;;  %v223_v35 = vadd.f32 %v222_v33, %v155_v26  ;;  %v249_v51 = vmul.f32 %v165_v27, %v165_v27 }
  0xb0   :  { %414 = vst [vmem:[%s545_s2 + $0x20] sm:$0xff] %v394_v28  }
  0xb1   :  { %416 = vst [vmem:[%s545_s2 + $0x30] sm:$0xff] %v404_v29   ;;  %v260_v38 = vadd.f32 %v259_v34, %v245_v32 }
  0xb5   :  { %v175_v36 = vpop.f32.mrf.mxu2  ;;  %v185_v37 = vpop.f32.mrf.mxu3 }
  0xb6   :  { %v157_v39 = vpop.f32.mrf.mxu0  ;;  %v167_v40 = vpop.f32.mrf.mxu1  ;;  %v253_v4 = vmul.f32 %v175_v36, %v175_v36  ;;  %v257_v16 = vmul.f32 %v185_v37, %v185_v37 }
  0xb7   :  { %v379_v41 = vpack.c.bf16 %v157_v39, %v155_v26  ;;  %v224_v42 = vadd.f32 %v223_v35, %v157_v39  ;;  %v246_v43 = vmul.f32 %v157_v39, %v157_v39  ;;  %v389_v44 = vpack.c.bf16 %v167_v40, %v165_v27 }
  0xb8   :  { %v250_v59 = vmul.f32 %v167_v40, %v167_v40 }
  0xb9   :  { %411 = vst [vmem:[%s545_s2 + $0x8] sm:$0xff] %v379_v41   ;;  %v225_v46 = vadd.f32 %v224_v42, %v160_v17  ;;  %v261_v47 = vadd.f32 %v260_v38, %v246_v43 }
  0xba   :  { %413 = vst [vmem:[%s545_s2 + $0x18] sm:$0xff] %v389_v44  }
  0xbb   :  { %v262_v49 = vadd.f32 %v261_v47, %v247_v45  ;;  %v226_v50 = vadd.f32 %v225_v46, %v162_v21 }
  0xbd   :  { %v227_v52 = vadd.f32 %v226_v50, %v165_v27  ;;  %v263_v53 = vadd.f32 %v262_v49, %v248_v48  ;;  %v177_v54 = vpop.f32.mrf.mxu2  ;;  %v187_v55 = vpop.f32.mrf.mxu3 }
  0xbe   :  { %v399_v56 = vpack.c.bf16 %v177_v54, %v175_v36  ;;  %v409_v57 = vpack.c.bf16 %v187_v55, %v185_v37  ;;  %v254_v8 = vmul.f32 %v177_v54, %v177_v54  ;;  %v258_v21 = vmul.f32 %v187_v55, %v187_v55 }
  0xbf   :  { %v228_v58 = vadd.f32 %v227_v52, %v167_v40  ;;  %v264_v60 = vadd.f32 %v263_v53, %v249_v51 }
  0xc0   :  { %415 = vst [vmem:[%s545_s2 + $0x28] sm:$0xff] %v399_v56  }
  0xc1   :  { %v229_v62 = vadd.f32 %v228_v58, %v170_v18  ;;  %v265_v63 = vadd.f32 %v264_v60, %v250_v59  ;;  %417 = vst [vmem:[%s545_s2 + $0x38] sm:$0xff] %v409_v57  }
  0xc3   :  { %v266_v1 = vadd.f32 %v265_v63, %v251_v61  ;;  %v230_v2 = vadd.f32 %v229_v62, %v172_v24 }
  0xc5   :  { %v231_v3 = vadd.f32 %v230_v2, %v175_v36  ;;  %v267_v5 = vadd.f32 %v266_v1, %v252_v0 }
  0xc7   :  { %v268_v6 = vadd.f32 %v267_v5, %v253_v4  ;;  %v232_v7 = vadd.f32 %v231_v3, %v177_v54 }
  0xc9   :  { %v233_v10 = vadd.f32 %v232_v7, %v510_v19  ;;  %v269_v11 = vadd.f32 %v268_v6, %v254_v8 }
  0xcb   :  { %v270_v13 = vadd.f32 %v269_v11, %v255_v9  ;;  %v234_v14 = vadd.f32 %v233_v10, %v182_v25 }
  0xcd   :  { %v235_v15 = vadd.f32 %v234_v14, %v185_v37  ;;  %v271_v17 = vadd.f32 %v270_v13, %v256_v12 }
  0xcf   :  { %v272_v18 = vadd.f32 %v271_v17, %v257_v16  ;;  %v236_v20 = vadd.f32 %v235_v15, %v187_v55 }
  0xd1   :  { %v237_v22 = vrot.slane %v236_v20, 4  ;;  %v273_v23 = vadd.f32 %v272_v18, %v258_v21 }
  0xd3   :  { %v238_v24 = vadd.f32 %v237_v22, %v236_v20  ;;  %v274_v26 = vrot.slane %v273_v23, 4 }
  0xd5   :  { %v239_v27 = vrot.slane %v238_v24, 2  ;;  %v275_v28 = vadd.f32 %v274_v26, %v273_v23 }
  0xd7   :  { %v240_v29 = vadd.f32 %v239_v27, %v238_v24  ;;  %v276_v30 = vrot.slane %v275_v28, 2 }
  0xd9   :  { %v241_v31 = vrot.slane %v240_v29, 1  ;;  %v277_v19 = vadd.f32 %v276_v30, %v275_v28 }
  0xdb   :  { %v278_v32 = vrot.slane %v277_v19, 1  ;;  %v242_v33 = vadd.f32 %v241_v31, %v240_v29 }
  0xdd   :  { %v279_v25 = vadd.f32 %v278_v32, %v277_v19 }
  0xdf   :  { %v281_v34 = vsel %vm280_vm0, %v242_v33, %v279_v25 }
  0xe0   :  { %282 = vst [vmem:[%s546_s3] sm:$0x3] %v281_v34 }

// kernel: basic_block_forward.6
= control target key start
LH: loop header
LB: loop body
LE: loop exit
PB: predicated region body
PF: predicated region fallthrough
CT: control target
= control target key end

     0   :  { %s336_s0 = inlined_call_operand.vmem [shape: bf16[128,128], index: 0, kind: input, shape index: {}]   ;;  %s337_s1 = inlined_call_operand.vmem [shape: f32[1,128], index: 1, kind: input, shape index: {}]   ;;  %s338_s2 = inlined_call_operand.vmem [shape: f32[1,128], index: 2, kind: input, shape index: {}]   ;;  %s339_s3 = inlined_call_operand.vmem [shape: bf16[128,128], index: 3, kind: output, shape index: {}]  }
   0x1   :  { %v139_v0 = vld [vmem:[%s336_s0] sm:$0xff]   ;;  %v210_v5 = vld [vmem:[%s336_s0 + $0x8] sm:$0xff]   ;;  %v211_v8 = vld [vmem:[%s336_s0 + $0x10] sm:$0xff]  }
   0x2   :  { %v252_v1 = vld [vmem:[%s337_s1] ss:$0 sm:$0xff]  ;;  %v140_v2 = vunpack.c.l.bf16 %v139_v0  ;;  %v141_v3 = vunpack.c.h.bf16 %v139_v0  ;;  %v144_v6 = vunpack.c.l.bf16 %v210_v5  ;;  %v145_v7 = vunpack.c.h.bf16 %v210_v5  ;;  %v212_v9 = vld [vmem:[%s336_s0 + $0x18] sm:$0xff]   ;;  %v214_v35 = vld [vmem:[%s336_s0 + $0x28] sm:$0xff]  }
   0x3   :  { %v257_v4 = vld [vmem:[%s338_s2] ss:$0 sm:$0xff]  ;;  %v148_v12 = vunpack.c.l.bf16 %v211_v8  ;;  %v149_v13 = vunpack.c.h.bf16 %v211_v8  ;;  %v152_v16 = vunpack.c.l.bf16 %v212_v9  ;;  %v153_v17 = vunpack.c.h.bf16 %v212_v9  ;;  %v215_v40 = vld [vmem:[%s336_s0 + $0x30] sm:$0xff]   ;;  %v216_v45 = vld [vmem:[%s336_s0 + $0x38] sm:$0xff]  }
   0x4   :  { %v50_v10 = vmul.f32 %v252_v1, %v140_v2  ;;  %v51_v11 = vmul.f32 %v252_v1, %v141_v3  ;;  %v52_v14 = vmul.f32 %v252_v1, %v144_v6  ;;  %v53_v15 = vmul.f32 %v252_v1, %v145_v7  ;;  %v213_v26 = vld [vmem:[%s336_s0 + $0x20] sm:$0xff]  }
   0x5   :  { %v54_v20 = vmul.f32 %v252_v1, %v148_v12  ;;  %v55_v21 = vmul.f32 %v252_v1, %v149_v13  ;;  %v56_v24 = vmul.f32 %v252_v1, %v152_v16  ;;  %v57_v25 = vmul.f32 %v252_v1, %v153_v17 }
   0x6   :  { %v70_v18 = vadd.f32 %v257_v4, %v50_v10  ;;  %v71_v19 = vadd.f32 %v257_v4, %v51_v11  ;;  %v72_v22 = vadd.f32 %v257_v4, %v52_v14  ;;  %v73_v23 = vadd.f32 %v257_v4, %v53_v15 }
   0x7   :  { %v74_v29 = vadd.f32 %v257_v4, %v54_v20  ;;  %v75_v30 = vadd.f32 %v257_v4, %v55_v21  ;;  %v76_v33 = vadd.f32 %v257_v4, %v56_v24  ;;  %v77_v34 = vadd.f32 %v257_v4, %v57_v25 }
   0x8   :  { %v86_v27 = vmax.f32 %v70_v18, 0.0  ;;  %v87_v28 = vmax.f32 %v71_v19, 0.0  ;;  %v88_v31 = vmax.f32 %v72_v22, 0.0  ;;  %v89_v32 = vmax.f32 %v73_v23, 0.0 }
   0x9   :  { %v90_v37 = vmax.f32 %v74_v29, 0.0  ;;  %v91_v38 = vmax.f32 %v75_v30, 0.0  ;;  %v156_v39 = vunpack.c.l.bf16 %v213_v26  ;;  %v92_v42 = vmax.f32 %v76_v33, 0.0 }
   0xa   :  { %v173_v36 = vpack.c.bf16 %v87_v28, %v86_v27  ;;  %v178_v41 = vpack.c.bf16 %v89_v32, %v88_v31  ;;  %v93_v43 = vmax.f32 %v77_v34, 0.0  ;;  %v157_v44 = vunpack.c.h.bf16 %v213_v26 }
   0xb   :  { %v183_v46 = vpack.c.bf16 %v91_v38, %v90_v37  ;;  %v58_v47 = vmul.f32 %v252_v1, %v156_v39  ;;  %v160_v48 = vunpack.c.l.bf16 %v214_v35  ;;  %v161_v49 = vunpack.c.h.bf16 %v214_v35 }
   0xc   :  { %174 = vst [vmem:[%s339_s3] sm:$0xff] %v173_v36   ;;  %v188_v50 = vpack.c.bf16 %v93_v43, %v92_v42  ;;  %v59_v51 = vmul.f32 %v252_v1, %v157_v44  ;;  %v164_v52 = vunpack.c.l.bf16 %v215_v40  ;;  %v165_v53 = vunpack.c.h.bf16 %v215_v40 }
   0xd   :  { %217 = vst [vmem:[%s339_s3 + $0x8] sm:$0xff] %v178_v41   ;;  %v78_v54 = vadd.f32 %v257_v4, %v58_v47  ;;  %v60_v55 = vmul.f32 %v252_v1, %v160_v48  ;;  %v61_v56 = vmul.f32 %v252_v1, %v161_v49  ;;  %v168_v57 = vunpack.c.l.bf16 %v216_v45 }
   0xe   :  { %218 = vst [vmem:[%s339_s3 + $0x10] sm:$0xff] %v183_v46   ;;  %v79_v58 = vadd.f32 %v257_v4, %v59_v51  ;;  %v62_v59 = vmul.f32 %v252_v1, %v164_v52  ;;  %v63_v60 = vmul.f32 %v252_v1, %v165_v53  ;;  %v169_v61 = vunpack.c.h.bf16 %v216_v45 }
   0xf   :  { %219 = vst [vmem:[%s339_s3 + $0x18] sm:$0xff] %v188_v50   ;;  %v94_v62 = vmax.f32 %v78_v54, 0.0  ;;  %v80_v63 = vadd.f32 %v257_v4, %v60_v55  ;;  %v81_v0 = vadd.f32 %v257_v4, %v61_v56  ;;  %v64_v2 = vmul.f32 %v252_v1, %v168_v57 }
  0x10   :  { %v95_v3 = vmax.f32 %v79_v58, 0.0  ;;  %v82_v5 = vadd.f32 %v257_v4, %v62_v59  ;;  %v83_v6 = vadd.f32 %v257_v4, %v63_v60  ;;  %v65_v7 = vmul.f32 %v252_v1, %v169_v61 }
  0x11   :  { %v96_v8 = vmax.f32 %v80_v63, 0.0  ;;  %v97_v9 = vmax.f32 %v81_v0, 0.0  ;;  %v84_v10 = vadd.f32 %v257_v4, %v64_v2 }
  0x12   :  { %v193_v11 = vpack.c.bf16 %v95_v3, %v94_v62  ;;  %v98_v12 = vmax.f32 %v82_v5, 0.0  ;;  %v99_v13 = vmax.f32 %v83_v6, 0.0  ;;  %v85_v14 = vadd.f32 %v257_v4, %v65_v7 }
  0x13   :  { %v198_v15 = vpack.c.bf16 %v97_v9, %v96_v8  ;;  %v100_v16 = vmax.f32 %v84_v10, 0.0 }
  0x14   :  { %220 = vst [vmem:[%s339_s3 + $0x20] sm:$0xff] %v193_v11   ;;  %v203_v17 = vpack.c.bf16 %v99_v13, %v98_v12  ;;  %v101_v18 = vmax.f32 %v85_v14, 0.0 }
  0x15   :  { %221 = vst [vmem:[%s339_s3 + $0x28] sm:$0xff] %v198_v15  }
  0x16   :  { %222 = vst [vmem:[%s339_s3 + $0x30] sm:$0xff] %v203_v17   ;;  %v208_v1 = vpack.c.bf16 %v101_v18, %v100_v16 }
  0x18   :  { %223 = vst [vmem:[%s339_s3 + $0x38] sm:$0xff] %v208_v1  }

// kernel: basic_block_forward.9
= control target key start
LH: loop header
LB: loop body
LE: loop exit
PB: predicated region body
PF: predicated region fallthrough
CT: control target
= control target key end

     0   :  { %s774_s2 = inlined_call_operand.vmem [shape: bf16[128,128], index: 2, kind: input, shape index: {}]   ;;  %s775_s3 = inlined_call_operand.vmem [shape: f32[1,128], index: 3, kind: input, shape index: {}]   ;;  %s776_s4 = inlined_call_operand.vmem [shape: f32[1,128], index: 4, kind: input, shape index: {}]   ;;  %s777_s5 = inlined_call_operand.vmem [shape: f32[1,128], index: 5, kind: input, shape index: {}]   ;;  %s778_s6 = inlined_call_operand.vmem [shape: f32[1,128], index: 6, kind: input, shape index: {}]   ;;  %s779_s1 = inlined_call_operand.vmem [shape: bf16[128,128], index: 1, kind: input, shape index: {}]   ;;  %s780_s0 = inlined_call_operand.vmem [shape: bf16[128,128], index: 0, kind: input, shape index: {}]   ;;  %s781_s7 = inlined_call_operand.vmem [shape: f32[128,128], index: 7, kind: output, shape index: {}]  }
   0x1   :  { %v446_v0 = vld [vmem:[%s774_s2 + $0x38] sm:$0xff]  ;;  %v445_v1 = vld [vmem:[%s774_s2 + $0x30] sm:$0xff]  ;;  %v444_v2 = vld [vmem:[%s774_s2 + $0x28] sm:$0xff] }
   0x2   :  { %154 = vmatpush.bf16.msra.mxu0 %v446_v0  ;;  %486 = vmatpush.bf16.msra.mxu1 %v446_v0  ;;  %v443_v3 = vld [vmem:[%s774_s2 + $0x20] sm:$0xff]  ;;  %v442_v4 = vld [vmem:[%s774_s2 + $0x18] sm:$0xff]  ;;  %v441_v5 = vld [vmem:[%s774_s2 + $0x10] sm:$0xff] }
   0x3   :  { %487 = vmatpush.bf16.msra.mxu2 %v446_v0  ;;  %488 = vmatpush.bf16.msra.mxu3 %v446_v0  ;;  %v440_v6 = vld [vmem:[%s774_s2 + $0x8] sm:$0xff]  ;;  %v439_v7 = vld [vmem:[%s774_s2] sm:$0xff]  ;;  %v433_v9 = vld [vmem:[%s779_s1 + $0x10] sm:$0xff] }
   0x4   :  { %v431_v8 = vld [vmem:[%s779_s1] sm:$0xff]  ;;  %v437_v11 = vld [vmem:[%s779_s1 + $0x30] sm:$0xff]  ;;  %v432_v12 = vld [vmem:[%s779_s1 + $0x8] sm:$0xff] }
   0x5   :  { %v435_v10 = vld [vmem:[%s779_s1 + $0x20] sm:$0xff]  ;;  %v434_v13 = vld [vmem:[%s779_s1 + $0x18] sm:$0xff]  ;;  %v436_v14 = vld [vmem:[%s779_s1 + $0x28] sm:$0xff] }
   0x6   :  { %155 = vmatpush.bf16.msra.mxu0 %v445_v1  ;;  %489 = vmatpush.bf16.msra.mxu1 %v445_v1  ;;  %v438_v15 = vld [vmem:[%s779_s1 + $0x38] sm:$0xff]  ;;  %v448_v16 = vld [vmem:[%s780_s0] sm:$0xff]   ;;  %v480_v17 = vld [vmem:[%s780_s0 + $0x10] sm:$0xff]  }
   0x7   :  { %490 = vmatpush.bf16.msra.mxu2 %v445_v1  ;;  %491 = vmatpush.bf16.msra.mxu3 %v445_v1  ;;  %v449_v18 = vunpack.c.l.bf16 %v448_v16  ;;  %v611_v19 = vld [vmem:[%s775_s3] ss:$0 sm:$0xff]  ;;  %v457_v20 = vunpack.c.l.bf16 %v480_v17  ;;  %v484_v25 = vld [vmem:[%s780_s0 + $0x30] sm:$0xff]   ;;  %v450_v29 = vunpack.c.h.bf16 %v448_v16  ;;  %v458_v30 = vunpack.c.h.bf16 %v480_v17  ;;  %v647_v46 = vld [vmem:[%s780_s0 + $0x8] sm:$0xff]  }
   0x8   :  { %v617_v22 = vld [vmem:[%s776_s4] ss:$0 sm:$0xff]  ;;  %v473_v28 = vunpack.c.l.bf16 %v484_v25  ;;  %v474_v45 = vunpack.c.h.bf16 %v484_v25  ;;  %v652_v47 = vld [vmem:[%s780_s0 + $0x18] sm:$0xff]   ;;  %v453_v58 = vunpack.c.l.bf16 %v647_v46 }
   0x9   :  { %v239_v21 = vmul.f32 %v611_v19, %v449_v18  ;;  %v243_v23 = vmul.f32 %v611_v19, %v457_v20  ;;  %v482_v24 = vld [vmem:[%s780_s0 + $0x20] sm:$0xff]   ;;  %v240_v40 = vmul.f32 %v611_v19, %v450_v29  ;;  %v244_v41 = vmul.f32 %v611_v19, %v458_v30 }
   0xa   :  { %156 = vmatpush.bf16.msra.mxu0 %v444_v2  ;;  %492 = vmatpush.bf16.msra.mxu1 %v444_v2  ;;  %v629_v26 = vld [vmem:[%s777_s5] ss:$0 sm:$0xff]  ;;  %v465_v27 = vunpack.c.l.bf16 %v482_v24  ;;  %v251_v39 = vmul.f32 %v611_v19, %v473_v28  ;;  %v466_v44 = vunpack.c.h.bf16 %v482_v24  ;;  %v461_v59 = vunpack.c.l.bf16 %v652_v47 }
   0xb   :  { %493 = vmatpush.bf16.msra.mxu2 %v444_v2  ;;  %494 = vmatpush.bf16.msra.mxu3 %v444_v2  ;;  %v259_v31 = vadd.f32 %v617_v22, %v239_v21  ;;  %v263_v32 = vadd.f32 %v617_v22, %v243_v23  ;;  %v637_v36 = vld [vmem:[%s778_s6] ss:$0 sm:$0xff]  ;;  %v260_v52 = vadd.f32 %v617_v22, %v240_v40  ;;  %v454_v24 = vunpack.c.h.bf16 %v647_v46 }
   0xc   :  { %v247_v38 = vmul.f32 %v611_v19, %v465_v27  ;;  %v271_v51 = vadd.f32 %v617_v22, %v251_v39  ;;  %v264_v53 = vadd.f32 %v617_v22, %v244_v41  ;;  %v248_v0 = vmul.f32 %v611_v19, %v466_v44 }
   0xd   :  { %v252_v1 = vmul.f32 %v611_v19, %v474_v45  ;;  %v462_v25 = vunpack.c.h.bf16 %v652_v47  ;;  %v242_v46 = vmul.f32 %v611_v19, %v454_v24 }
   0xe   :  { %157 = vmatpush.bf16.msra.mxu0 %v443_v3  ;;  %495 = vmatpush.bf16.msra.mxu1 %v443_v3  ;;  %v267_v50 = vadd.f32 %v617_v22, %v247_v38 }
   0xf   :  { %496 = vmatpush.bf16.msra.mxu2 %v443_v3  ;;  %497 = vmatpush.bf16.msra.mxu3 %v443_v3  ;;  %v246_v47 = vmul.f32 %v611_v19, %v462_v25 }
  0x12   :  { %158 = vmatpush.bf16.msra.mxu0 %v442_v4  ;;  %498 = vmatpush.bf16.msra.mxu1 %v442_v4 }
  0x13   :  { %499 = vmatpush.bf16.msra.mxu2 %v442_v4  ;;  %500 = vmatpush.bf16.msra.mxu3 %v442_v4 }
  0x16   :  { %159 = vmatpush.bf16.msra.mxu0 %v441_v5  ;;  %501 = vmatpush.bf16.msra.mxu1 %v441_v5 }
  0x17   :  { %502 = vmatpush.bf16.msra.mxu2 %v441_v5  ;;  %503 = vmatpush.bf16.msra.mxu3 %v441_v5 }
  0x1a   :  { %160 = vmatpush.bf16.msra.mxu0 %v440_v6  ;;  %504 = vmatpush.bf16.msra.mxu1 %v440_v6 }
  0x1b   :  { %505 = vmatpush.bf16.msra.mxu2 %v440_v6  ;;  %506 = vmatpush.bf16.msra.mxu3 %v440_v6  ;;  %v677_v6 = vld [vmem:[%s780_s0 + $0x28] sm:$0xff]  }
  0x1c   :  { %v469_v18 = vunpack.c.l.bf16 %v677_v6 }
  0x1e   :  { %161 = vmatpush.bf16.msra.mxu0 %v439_v7  ;;  %507 = vmatpush.bf16.msra.mxu1 %v439_v7  ;;  %v249_v40 = vmul.f32 %v611_v19, %v469_v18 }
  0x1f   :  { %508 = vmatpush.bf16.msra.mxu2 %v439_v7  ;;  %509 = vmatpush.bf16.msra.mxu3 %v439_v7  ;;  %v682_v7 = vld [vmem:[%s780_s0 + $0x38] sm:$0xff]  }
  0x20   :  { %v477_v20 = vunpack.c.l.bf16 %v682_v7 }
  0x21   :  { %162 = vmatmul.bf16.vlgmr.msra.gmra.mxu0 %v431_v8  ;;  %172 = vmatmul.bf16.vlgmr.msra.gmra.mxu1 %v433_v9 }
  0x22   :  { %182 = vmatmul.bf16.vlgmr.msra.gmra.mxu2 %v435_v10  ;;  %192 = vmatmul.bf16.vlgmr.msra.gmra.mxu3 %v437_v11  ;;  %v241_v10 = vmul.f32 %v611_v19, %v453_v58  ;;  %v245_v11 = vmul.f32 %v611_v19, %v461_v59  ;;  %v253_v41 = vmul.f32 %v611_v19, %v477_v20 }
  0x31   :  { %167 = vmatmul.bf16.gmra.mxu0 %v432_v12  ;;  %177 = vmatmul.bf16.gmra.mxu1 %v434_v13 }
  0x32   :  { %187 = vmatmul.bf16.gmra.mxu2 %v436_v14  ;;  %197 = vmatmul.bf16.gmra.mxu3 %v438_v15  ;;  %v268_v14 = vadd.f32 %v617_v22, %v248_v0  ;;  %v272_v15 = vadd.f32 %v617_v22, %v252_v1 }
  0x9e   :  { %v163_v33 = vpop.f32.mrf.mxu0  ;;  %v173_v34 = vpop.f32.mrf.mxu1 }
  0x9f   :  { %v279_v35 = vmul.f32 %v629_v26, %v163_v33  ;;  %v283_v37 = vmul.f32 %v629_v26, %v173_v34 }
  0xa1   :  { %v295_v42 = vadd.f32 %v279_v35, %v259_v31  ;;  %v299_v43 = vadd.f32 %v283_v37, %v263_v32  ;;  %v261_v31 = vadd.f32 %v617_v22, %v241_v10  ;;  %v265_v32 = vadd.f32 %v617_v22, %v245_v11 }
  0xa3   :  { %v315_v48 = vadd.f32 %v637_v36, %v295_v42  ;;  %v319_v49 = vadd.f32 %v637_v36, %v299_v43 }
  0xa5   :  { %v331_v54 = vmax.f32 %v315_v48, 0.0  ;;  %v335_v55 = vmax.f32 %v319_v49, 0.0  ;;  %v183_v56 = vpop.f32.mrf.mxu2  ;;  %v193_v57 = vpop.f32.mrf.mxu3 }
  0xa6   :  { %v287_v60 = vmul.f32 %v629_v26, %v183_v56  ;;  %v291_v61 = vmul.f32 %v629_v26, %v193_v57  ;;  %v165_v62 = vpop.f32.mrf.mxu0  ;;  %v175_v63 = vpop.f32.mrf.mxu1  ;;  %v470_v56 = vunpack.c.h.bf16 %v677_v6  ;;  %v478_v57 = vunpack.c.h.bf16 %v682_v7 }
  0xa7   :  { %347 = vst [vmem:[%s781_s7] sm:$0xff] %v331_v54  ;;  %v280_v2 = vmul.f32 %v629_v26, %v165_v62  ;;  %v284_v3 = vmul.f32 %v629_v26, %v175_v63  ;;  %v262_v62 = vadd.f32 %v617_v22, %v242_v46  ;;  %v266_v63 = vadd.f32 %v617_v22, %v246_v47 }
  0xa8   :  { %351 = vst [vmem:[%s781_s7 + $0x20] sm:$0xff] %v335_v55  ;;  %v303_v4 = vadd.f32 %v287_v60, %v267_v50  ;;  %v307_v5 = vadd.f32 %v291_v61, %v271_v51 }
  0xa9   :  { %v296_v8 = vadd.f32 %v280_v2, %v260_v52  ;;  %v300_v9 = vadd.f32 %v284_v3, %v264_v53  ;;  %v269_v52 = vadd.f32 %v617_v22, %v249_v40  ;;  %v273_v53 = vadd.f32 %v617_v22, %v253_v41 }
  0xaa   :  { %v323_v12 = vadd.f32 %v637_v36, %v303_v4  ;;  %v327_v13 = vadd.f32 %v637_v36, %v307_v5 }
  0xab   :  { %v316_v16 = vadd.f32 %v637_v36, %v296_v8  ;;  %v320_v17 = vadd.f32 %v637_v36, %v300_v9  ;;  %v250_v8 = vmul.f32 %v611_v19, %v470_v56  ;;  %v254_v9 = vmul.f32 %v611_v19, %v478_v57 }
  0xac   :  { %v339_v21 = vmax.f32 %v323_v12, 0.0  ;;  %v343_v23 = vmax.f32 %v327_v13, 0.0 }
  0xad   :  { %v332_v27 = vmax.f32 %v316_v16, 0.0  ;;  %v336_v28 = vmax.f32 %v320_v17, 0.0  ;;  %v185_v29 = vpop.f32.mrf.mxu2  ;;  %v195_v30 = vpop.f32.mrf.mxu3  ;;  %v270_v18 = vadd.f32 %v617_v22, %v250_v8  ;;  %v274_v19 = vadd.f32 %v617_v22, %v254_v9 }
  0xae   :  { %355 = vst [vmem:[%s781_s7 + $0x40] sm:$0xff] %v339_v21  ;;  %v288_v33 = vmul.f32 %v629_v26, %v185_v29  ;;  %v292_v34 = vmul.f32 %v629_v26, %v195_v30  ;;  %v168_v35 = vpop.f32.mrf.mxu0  ;;  %v178_v37 = vpop.f32.mrf.mxu1 }
  0xaf   :  { %359 = vst [vmem:[%s781_s7 + $0x60] sm:$0xff] %v343_v23  ;;  %v281_v38 = vmul.f32 %v629_v26, %v168_v35  ;;  %v285_v39 = vmul.f32 %v629_v26, %v178_v37 }
  0xb0   :  { %348 = vst [vmem:[%s781_s7 + $0x8] sm:$0xff] %v332_v27  ;;  %v304_v42 = vadd.f32 %v288_v33, %v268_v14  ;;  %v308_v43 = vadd.f32 %v292_v34, %v272_v15 }
  0xb1   :  { %352 = vst [vmem:[%s781_s7 + $0x28] sm:$0xff] %v336_v28  ;;  %v297_v44 = vadd.f32 %v281_v38, %v261_v31  ;;  %v301_v45 = vadd.f32 %v285_v39, %v265_v32 }
  0xb2   :  { %v324_v48 = vadd.f32 %v637_v36, %v304_v42  ;;  %v328_v49 = vadd.f32 %v637_v36, %v308_v43 }
  0xb3   :  { %v317_v50 = vadd.f32 %v637_v36, %v297_v44  ;;  %v321_v51 = vadd.f32 %v637_v36, %v301_v45 }
  0xb4   :  { %v340_v54 = vmax.f32 %v324_v48, 0.0  ;;  %v344_v55 = vmax.f32 %v328_v49, 0.0 }
  0xb5   :  { %v333_v58 = vmax.f32 %v317_v50, 0.0  ;;  %v337_v59 = vmax.f32 %v321_v51, 0.0  ;;  %v188_v60 = vpop.f32.mrf.mxu2  ;;  %v198_v61 = vpop.f32.mrf.mxu3 }
  0xb6   :  { %356 = vst [vmem:[%s781_s7 + $0x48] sm:$0xff] %v340_v54  ;;  %v289_v0 = vmul.f32 %v629_v26, %v188_v60  ;;  %v293_v1 = vmul.f32 %v629_v26, %v198_v61  ;;  %v170_v2 = vpop.f32.mrf.mxu0  ;;  %v180_v3 = vpop.f32.mrf.mxu1 }
  0xb7   :  { %360 = vst [vmem:[%s781_s7 + $0x68] sm:$0xff] %v344_v55  ;;  %v282_v4 = vmul.f32 %v629_v26, %v170_v2  ;;  %v286_v5 = vmul.f32 %v629_v26, %v180_v3 }
  0xb8   :  { %349 = vst [vmem:[%s781_s7 + $0x10] sm:$0xff] %v333_v58  ;;  %v305_v6 = vadd.f32 %v289_v0, %v269_v52  ;;  %v309_v7 = vadd.f32 %v293_v1, %v273_v53 }
  0xb9   :  { %353 = vst [vmem:[%s781_s7 + $0x30] sm:$0xff] %v337_v59  ;;  %v298_v10 = vadd.f32 %v282_v4, %v262_v62  ;;  %v302_v11 = vadd.f32 %v286_v5, %v266_v63 }
  0xba   :  { %v325_v12 = vadd.f32 %v637_v36, %v305_v6  ;;  %v329_v13 = vadd.f32 %v637_v36, %v309_v7 }
  0xbb   :  { %v318_v14 = vadd.f32 %v637_v36, %v298_v10  ;;  %v322_v15 = vadd.f32 %v637_v36, %v302_v11 }
  0xbc   :  { %v341_v16 = vmax.f32 %v325_v12, 0.0  ;;  %v345_v17 = vmax.f32 %v329_v13, 0.0 }
  0xbd   :  { %v334_v20 = vmax.f32 %v318_v14, 0.0  ;;  %v338_v21 = vmax.f32 %v322_v15, 0.0  ;;  %v190_v23 = vpop.f32.mrf.mxu2  ;;  %v200_v24 = vpop.f32.mrf.mxu3 }
  0xbe   :  { %357 = vst [vmem:[%s781_s7 + $0x50] sm:$0xff] %v341_v16  ;;  %v290_v25 = vmul.f32 %v629_v26, %v190_v23  ;;  %v294_v27 = vmul.f32 %v629_v26, %v200_v24 }
  0xbf   :  { %361 = vst [vmem:[%s781_s7 + $0x70] sm:$0xff] %v345_v17 }
  0xc0   :  { %350 = vst [vmem:[%s781_s7 + $0x18] sm:$0xff] %v334_v20  ;;  %v306_v22 = vadd.f32 %v290_v25, %v270_v18  ;;  %v310_v28 = vadd.f32 %v294_v27, %v274_v19 }
  0xc1   :  { %354 = vst [vmem:[%s781_s7 + $0x38] sm:$0xff] %v338_v21 }
  0xc2   :  { %v326_v29 = vadd.f32 %v637_v36, %v306_v22  ;;  %v330_v30 = vadd.f32 %v637_v36, %v310_v28 }
  0xc4   :  { %v342_v31 = vmax.f32 %v326_v29, 0.0  ;;  %v346_v26 = vmax.f32 %v330_v30, 0.0 }
  0xc6   :  { %358 = vst [vmem:[%s781_s7 + $0x58] sm:$0xff] %v342_v31 }
  0xc7   :  { %362 = vst [vmem:[%s781_s7 + $0x78] sm:$0xff] %v346_v26 }

// kernel: basic_block_forward.8
= control target key start
LH: loop header
LB: loop body
LE: loop exit
PB: predicated region body
PF: predicated region fallthrough
CT: control target
= control target key end

     0   :  { %vm246_vm0 = vcmask 1040384   ;;  %s423_s1 = inlined_call_operand.vmem [shape: bf16[128,128], index: 1, kind: input, shape index: {}]   ;;  %s424_s0 = inlined_call_operand.vmem [shape: bf16[128,128], index: 0, kind: input, shape index: {}]   ;;  %s425_s2 = inlined_call_operand.vmem [shape: f32[1,2,128], index: 2, kind: output, shape index: {}]  }
   0x1   :  { %v332_v0 = vld [vmem:[%s423_s1 + $0x38] sm:$0xff]  ;;  %v331_v1 = vld [vmem:[%s423_s1 + $0x30] sm:$0xff]  ;;  %v330_v2 = vld [vmem:[%s423_s1 + $0x28] sm:$0xff] }
   0x2   :  { %139 = vmatpush.bf16.msra.mxu0 %v332_v0  ;;  %333 = vmatpush.bf16.msra.mxu1 %v332_v0  ;;  %v329_v3 = vld [vmem:[%s423_s1 + $0x20] sm:$0xff]  ;;  %v328_v4 = vld [vmem:[%s423_s1 + $0x18] sm:$0xff]  ;;  %v327_v5 = vld [vmem:[%s423_s1 + $0x10] sm:$0xff] }
   0x3   :  { %334 = vmatpush.bf16.msra.mxu2 %v332_v0  ;;  %335 = vmatpush.bf16.msra.mxu3 %v332_v0  ;;  %v326_v6 = vld [vmem:[%s423_s1 + $0x8] sm:$0xff]  ;;  %v325_v7 = vld [vmem:[%s423_s1] sm:$0xff]  ;;  %v319_v9 = vld [vmem:[%s424_s0 + $0x10] sm:$0xff] }
   0x4   :  { %v317_v8 = vld [vmem:[%s424_s0] sm:$0xff]  ;;  %v323_v11 = vld [vmem:[%s424_s0 + $0x30] sm:$0xff]  ;;  %v318_v12 = vld [vmem:[%s424_s0 + $0x8] sm:$0xff] }
   0x5   :  { %v321_v10 = vld [vmem:[%s424_s0 + $0x20] sm:$0xff]  ;;  %v320_v13 = vld [vmem:[%s424_s0 + $0x18] sm:$0xff]  ;;  %v322_v14 = vld [vmem:[%s424_s0 + $0x28] sm:$0xff] }
   0x6   :  { %140 = vmatpush.bf16.msra.mxu0 %v331_v1  ;;  %336 = vmatpush.bf16.msra.mxu1 %v331_v1  ;;  %v324_v15 = vld [vmem:[%s424_s0 + $0x38] sm:$0xff] }
   0x7   :  { %337 = vmatpush.bf16.msra.mxu2 %v331_v1  ;;  %338 = vmatpush.bf16.msra.mxu3 %v331_v1 }
   0xa   :  { %141 = vmatpush.bf16.msra.mxu0 %v330_v2  ;;  %339 = vmatpush.bf16.msra.mxu1 %v330_v2 }
   0xb   :  { %340 = vmatpush.bf16.msra.mxu2 %v330_v2  ;;  %341 = vmatpush.bf16.msra.mxu3 %v330_v2 }
   0xe   :  { %142 = vmatpush.bf16.msra.mxu0 %v329_v3  ;;  %342 = vmatpush.bf16.msra.mxu1 %v329_v3 }
   0xf   :  { %343 = vmatpush.bf16.msra.mxu2 %v329_v3  ;;  %344 = vmatpush.bf16.msra.mxu3 %v329_v3 }
  0x12   :  { %143 = vmatpush.bf16.msra.mxu0 %v328_v4  ;;  %345 = vmatpush.bf16.msra.mxu1 %v328_v4 }
  0x13   :  { %346 = vmatpush.bf16.msra.mxu2 %v328_v4  ;;  %347 = vmatpush.bf16.msra.mxu3 %v328_v4 }
  0x16   :  { %144 = vmatpush.bf16.msra.mxu0 %v327_v5  ;;  %348 = vmatpush.bf16.msra.mxu1 %v327_v5 }
  0x17   :  { %349 = vmatpush.bf16.msra.mxu2 %v327_v5  ;;  %350 = vmatpush.bf16.msra.mxu3 %v327_v5 }
  0x1a   :  { %145 = vmatpush.bf16.msra.mxu0 %v326_v6  ;;  %351 = vmatpush.bf16.msra.mxu1 %v326_v6 }
  0x1b   :  { %352 = vmatpush.bf16.msra.mxu2 %v326_v6  ;;  %353 = vmatpush.bf16.msra.mxu3 %v326_v6 }
  0x1e   :  { %146 = vmatpush.bf16.msra.mxu0 %v325_v7  ;;  %354 = vmatpush.bf16.msra.mxu1 %v325_v7 }
  0x1f   :  { %355 = vmatpush.bf16.msra.mxu2 %v325_v7  ;;  %356 = vmatpush.bf16.msra.mxu3 %v325_v7 }
  0x21   :  { %147 = vmatmul.bf16.vlgmr.msra.gmra.mxu0 %v317_v8  ;;  %157 = vmatmul.bf16.vlgmr.msra.gmra.mxu1 %v319_v9 }
  0x22   :  { %167 = vmatmul.bf16.vlgmr.msra.gmra.mxu2 %v321_v10  ;;  %177 = vmatmul.bf16.vlgmr.msra.gmra.mxu3 %v323_v11 }
  0x31   :  { %152 = vmatmul.bf16.gmra.mxu0 %v318_v12  ;;  %162 = vmatmul.bf16.gmra.mxu1 %v320_v13 }
  0x32   :  { %172 = vmatmul.bf16.gmra.mxu2 %v322_v14  ;;  %182 = vmatmul.bf16.gmra.mxu3 %v324_v15 }
  0x9e   :  { %v148_v16 = vpop.f32.mrf.mxu0  ;;  %v158_v17 = vpop.f32.mrf.mxu1 }
  0x9f   :  { %v209_v26 = vmul.f32 %v148_v16, %v148_v16  ;;  %v213_v36 = vmul.f32 %v158_v17, %v158_v17 }
  0xa5   :  { %v168_v19 = vpop.f32.mrf.mxu2  ;;  %v178_v22 = vpop.f32.mrf.mxu3 }
  0xa6   :  { %v150_v18 = vpop.f32.mrf.mxu0  ;;  %v160_v20 = vpop.f32.mrf.mxu1  ;;  %v217_v50 = vmul.f32 %v168_v19, %v168_v19  ;;  %v221_v0 = vmul.f32 %v178_v22, %v178_v22 }
  0xa7   :  { %v210_v24 = vmul.f32 %v150_v18, %v150_v18  ;;  %v188_v27 = vadd.f32 %v150_v18, %v148_v16  ;;  %v214_v40 = vmul.f32 %v160_v20, %v160_v20 }
  0xa9   :  { %v225_v29 = vadd.f32 %v210_v24, %v209_v26 }
  0xad   :  { %v170_v23 = vpop.f32.mrf.mxu2  ;;  %v180_v35 = vpop.f32.mrf.mxu3 }
  0xae   :  { %v153_v21 = vpop.f32.mrf.mxu0  ;;  %v163_v25 = vpop.f32.mrf.mxu1  ;;  %v218_v54 = vmul.f32 %v170_v23, %v170_v23  ;;  %v222_v3 = vmul.f32 %v180_v35, %v180_v35 }
  0xaf   :  { %v211_v28 = vmul.f32 %v153_v21, %v153_v21  ;;  %v189_v30 = vadd.f32 %v188_v27, %v153_v21  ;;  %v215_v44 = vmul.f32 %v163_v25, %v163_v25 }
  0xb1   :  { %v226_v32 = vadd.f32 %v225_v29, %v211_v28 }
  0xb5   :  { %v173_v39 = vpop.f32.mrf.mxu2  ;;  %v183_v53 = vpop.f32.mrf.mxu3 }
  0xb6   :  { %v155_v31 = vpop.f32.mrf.mxu0  ;;  %v165_v43 = vpop.f32.mrf.mxu1  ;;  %v219_v59 = vmul.f32 %v173_v39, %v173_v39  ;;  %v223_v8 = vmul.f32 %v183_v53, %v183_v53 }
  0xb7   :  { %v190_v33 = vadd.f32 %v189_v30, %v155_v31  ;;  %v212_v34 = vmul.f32 %v155_v31, %v155_v31  ;;  %v216_v48 = vmul.f32 %v165_v43, %v165_v43 }
  0xb9   :  { %v191_v37 = vadd.f32 %v190_v33, %v158_v17  ;;  %v227_v38 = vadd.f32 %v226_v32, %v212_v34 }
  0xbb   :  { %v228_v41 = vadd.f32 %v227_v38, %v213_v36  ;;  %v192_v42 = vadd.f32 %v191_v37, %v160_v20 }
  0xbd   :  { %v193_v45 = vadd.f32 %v192_v42, %v163_v25  ;;  %v229_v46 = vadd.f32 %v228_v41, %v214_v40  ;;  %v175_v57 = vpop.f32.mrf.mxu2  ;;  %v185_v6 = vpop.f32.mrf.mxu3 }
  0xbe   :  { %v220_v63 = vmul.f32 %v175_v57, %v175_v57  ;;  %v224_v12 = vmul.f32 %v185_v6, %v185_v6 }
  0xbf   :  { %v194_v47 = vadd.f32 %v193_v45, %v165_v43  ;;  %v230_v49 = vadd.f32 %v229_v46, %v215_v44 }
  0xc1   :  { %v195_v51 = vadd.f32 %v194_v47, %v168_v19  ;;  %v231_v52 = vadd.f32 %v230_v49, %v216_v48 }
  0xc3   :  { %v232_v55 = vadd.f32 %v231_v52, %v217_v50  ;;  %v196_v56 = vadd.f32 %v195_v51, %v170_v23 }
  0xc5   :  { %v197_v58 = vadd.f32 %v196_v56, %v173_v39  ;;  %v233_v60 = vadd.f32 %v232_v55, %v218_v54 }
  0xc7   :  { %v234_v61 = vadd.f32 %v233_v60, %v219_v59  ;;  %v198_v62 = vadd.f32 %v197_v58, %v175_v57 }
  0xc9   :  { %v199_v1 = vadd.f32 %v198_v62, %v178_v22  ;;  %v235_v2 = vadd.f32 %v234_v61, %v220_v63 }
  0xcb   :  { %v236_v4 = vadd.f32 %v235_v2, %v221_v0  ;;  %v200_v5 = vadd.f32 %v199_v1, %v180_v35 }
  0xcd   :  { %v201_v7 = vadd.f32 %v200_v5, %v183_v53  ;;  %v237_v9 = vadd.f32 %v236_v4, %v222_v3 }
  0xcf   :  { %v238_v10 = vadd.f32 %v237_v9, %v223_v8  ;;  %v202_v11 = vadd.f32 %v201_v7, %v185_v6 }
  0xd1   :  { %v203_v13 = vrot.slane %v202_v11, 4  ;;  %v239_v14 = vadd.f32 %v238_v10, %v224_v12 }
  0xd3   :  { %v204_v15 = vadd.f32 %v203_v13, %v202_v11  ;;  %v240_v16 = vrot.slane %v239_v14, 4 }
  0xd5   :  { %v205_v17 = vrot.slane %v204_v15, 2  ;;  %v241_v18 = vadd.f32 %v240_v16, %v239_v14 }
  0xd7   :  { %v206_v19 = vadd.f32 %v205_v17, %v204_v15  ;;  %v242_v20 = vrot.slane %v241_v18, 2 }
  0xd9   :  { %v207_v21 = vrot.slane %v206_v19, 1  ;;  %v243_v22 = vadd.f32 %v242_v20, %v241_v18 }
  0xdb   :  { %v244_v23 = vrot.slane %v243_v22, 1  ;;  %v208_v24 = vadd.f32 %v207_v21, %v206_v19 }
  0xdd   :  { %v245_v25 = vadd.f32 %v244_v23, %v243_v22 }
  0xdf   :  { %v247_v26 = vsel %vm246_vm0, %v208_v24, %v245_v25 }
  0xe0   :  { %248 = vst [vmem:[%s425_s2] sm:$0x3] %v247_v26 }

</bundles_post_ra>
